<compile_context>
chip_gen: v7x
topology: tpu7x:2x2x1
jax: 0.10.0
libtpu: 0.0.40
codegen_flags: <defaults>
</compile_context>

<pallas_src>
import functools

import jax
import jax.numpy as jnp
from jax.experimental import pallas as pl
from jax.experimental.pallas import tpu as pltpu


# ---------------------------------------------------------------------------
# helpers
# ---------------------------------------------------------------------------
def _round_up(n, m):
    return ((n + m - 1) // m) * m


def _leaky_relu(x, slope=0.1):
    return jnp.where(x >= 0, x, slope * x)


def _layer_norm_padded(x, gamma, beta, *, true_n, eps=1e-5):
    """LayerNorm over the last dim of a lane-padded tensor.

    `x` has pad columns that are exactly 0; statistics are computed over the
    TRUE feature count.  Padded gamma/beta are 0, so padded outputs stay 0.
    """
    pad_n = x.shape[-1]
    s = jnp.sum(x, axis=-1, keepdims=True)
    mu = s / true_n
    d = x - mu
    # padded columns contribute (0 - mu)^2 = mu^2 each; subtract them out.
    ssq = jnp.sum(d * d, axis=-1, keepdims=True) - (pad_n - true_n) * mu * mu
    var = ssq / true_n
    return d * jax.lax.rsqrt(var + eps) * gamma + beta


# ---------------------------------------------------------------------------
# Pallas kernel: whole forward pass for one batch tile.
# ---------------------------------------------------------------------------
def up_three_layer_kernel(
    x_ref,
    w11_ref, b11_ref, g1_ref, be1_ref,     # fc11 + LayerNorm(hid)   (lane-padded)
    w12_ref, b12_ref, g3_ref, be3_ref,     # fc12 + LayerNorm(hid2)  (lane-padded)
    w13_ref, b13_ref,                      # fc13                    (lane-padded)
    w14_ref, b14_ref,                      # fc14                    (lane-padded)
    out_ref,
    *, hid, hid2,
):
    x = x_ref[...].astype(jnp.float32)

    f1 = _leaky_relu(
        jnp.dot(x, w11_ref[...], preferred_element_type=jnp.float32) + b11_ref[...])
    f1 = _layer_norm_padded(f1, g1_ref[...], be1_ref[...], true_n=hid)

    f2 = _leaky_relu(
        jnp.dot(f1, w12_ref[...], preferred_element_type=jnp.float32) + b12_ref[...])
    f3 = _layer_norm_padded(f2, g3_ref[...], be3_ref[...], true_n=hid2)

    f3 = _leaky_relu(
        jnp.dot(f3, w13_ref[...], preferred_element_type=jnp.float32) + b13_ref[...])

    f4 = jnp.dot(f3, w14_ref[...], preferred_element_type=jnp.float32) + b14_ref[...]
    out_ref[...] = f4.astype(out_ref.dtype)


# ---------------------------------------------------------------------------
# Parameter construction (deterministic, torch.nn.Linear-style init).
# ---------------------------------------------------------------------------
def init_params(key, in_dim, out_dim, hid=64, hid2=32, hid3=100):
    def lin(k, fan_in, fan_out):
        kw, kb = jax.random.split(k)
        s = 1.0 / jnp.sqrt(fan_in)
        w = jax.random.uniform(kw, (fan_in, fan_out), jnp.float32, -s, s)
        b = jax.random.uniform(kb, (1, fan_out), jnp.float32, -s, s)
        return w, b

    k11, k12, k13, k14 = jax.random.split(key, 4)
    p = {}
    # Extra zero-init fc*_b Parameters of the torch module fold in as +0 (exact).
    p["w11"], p["b11"] = lin(k11, in_dim, hid)
    p["w12"], p["b12"] = lin(k12, hid, hid2)
    p["w13"], p["b13"] = lin(k13, hid2, hid3)
    p["w14"], p["b14"] = lin(k14, hid3, out_dim)
    p["g1"] = jnp.ones((1, hid), jnp.float32)
    p["be1"] = jnp.zeros((1, hid), jnp.float32)
    p["g3"] = jnp.ones((1, hid2), jnp.float32)
    p["be3"] = jnp.zeros((1, hid2), jnp.float32)
    return p


def pad_params_for_tpu(p, lane=128):
    """Zero-pad ALL feature dims (hid, hid2, hid3, out) to lane multiples.

    Exact because: zero weight columns + zero bias -> pre-activation 0 ->
    LeakyReLU(0)=0; LayerNorm uses count-corrected stats with padded gamma/beta
    of 0 so padded columns stay 0; zero rows in the next weight absorb them.
    """
    hid = p["w11"].shape[1]
    hid2 = p["w12"].shape[1]
    hid3 = p["w13"].shape[1]
    out = p["w14"].shape[1]
    h1p = _round_up(hid, lane)
    h2p = _round_up(hid2, lane)
    h3p = _round_up(hid3, lane)
    outp = _round_up(out, lane)

    def pc(a, cols):                     # pad columns (last dim)
        return jnp.pad(a, ((0, 0), (0, cols - a.shape[1])))

    def prc(a, rows, cols):              # pad rows and columns
        return jnp.pad(a, ((0, rows - a.shape[0]), (0, cols - a.shape[1])))

    q = {}
    q["w11"] = pc(p["w11"], h1p)
    q["b11"] = pc(p["b11"], h1p)
    q["g1"] = pc(p["g1"], h1p)          # padded gamma = 0
    q["be1"] = pc(p["be1"], h1p)        # padded beta  = 0
    q["w12"] = prc(p["w12"], h1p, h2p)
    q["b12"] = pc(p["b12"], h2p)
    q["g3"] = pc(p["g3"], h2p)
    q["be3"] = pc(p["be3"], h2p)
    q["w13"] = prc(p["w13"], h2p, h3p)
    q["b13"] = pc(p["b13"], h3p)
    q["w14"] = prc(p["w14"], h3p, outp)
    q["b14"] = pc(p["b14"], outp)
    return q


_PARAM_ORDER = [
    "w11", "b11", "g1", "be1",
    "w12", "b12", "g3", "be3",
    "w13", "b13", "w14", "b14",
]


def _resident_spec(shape):
    # Full-array block, constant index map -> stays VMEM-resident across the grid.
    nd = len(shape)
    return pl.BlockSpec(shape, lambda i, _nd=nd: (0,) * _nd)


def _choose_tile(B, tile_b):
    """Pick a batch tile (multiple of 8) and the padded batch size."""
    Bp8 = _round_up(B, 8)
    if tile_b is not None:
        tb = _round_up(min(tile_b, Bp8), 8)
    else:
        target = 2048                       # amortizes ~0.35us/grid-step overhead
        if Bp8 <= target:
            tb = Bp8                        # single step, no batch padding waste
        else:
            # >=2 steps so the "parallel" batch axis feeds both v7x TensorCores.
            n_steps = max(2, -(-Bp8 // target))
            tb = _round_up(-(-Bp8 // n_steps), 8)
    Bp = _round_up(B, tb)
    return tb, Bp


# ---------------------------------------------------------------------------
# Wrapper: batch-tiled pallas_call.
# ---------------------------------------------------------------------------
@functools.partial(jax.jit,
                   static_argnames=("out_dim", "hid", "hid2", "tile_b", "trim"))
def up_three_layer_forward(x, params, *, out_dim, hid=64, hid2=32,
                           tile_b=None, trim=True):
    B, in_dim = x.shape
    h1p = params["w11"].shape[1]
    h2p = params["w12"].shape[1]
    h3p = params["w13"].shape[1]
    out_pad = params["w14"].shape[1]

    tb, Bp = _choose_tile(B, tile_b)
    if Bp != B:                             # skipped entirely when B % tb == 0
        x = jnp.pad(x, ((0, Bp - B), (0, 0)))
    grid = (Bp // tb,)

    args = [x] + [params[k] for k in _PARAM_ORDER]
    in_specs = [pl.BlockSpec((tb, in_dim), lambda i: (i, 0))]
    in_specs += [_resident_spec(params[k].shape) for k in _PARAM_ORDER]

    flops = 2 * Bp * (in_dim * h1p + h1p * h2p + h2p * h3p + h3p * out_pad)
    param_bytes = sum(int(params[k].size) * params[k].dtype.itemsize
                      for k in _PARAM_ORDER)
    bytes_accessed = Bp * in_dim * 4 + Bp * out_pad * 4 + param_bytes

    kernel = functools.partial(up_three_layer_kernel, hid=hid, hid2=hid2)

    out = pl.pallas_call(
        kernel,
        out_shape=jax.ShapeDtypeStruct((Bp, out_pad), jnp.float32),
        grid=grid,
        in_specs=in_specs,
        out_specs=pl.BlockSpec((tb, out_pad), lambda i: (i, 0)),
        compiler_params=pltpu.CompilerParams(
            dimension_semantics=("parallel",),     # dual-TC sharding on v7x
            vmem_limit_bytes=32 * 1024 * 1024,     # big tiles compile on v5e too
        ),
        cost_estimate=pl.CostEstimate(
            flops=int(flops),
            transcendentals=int(2 * Bp),           # 2 rsqrt per row (2 LayerNorms)
            bytes_accessed=int(bytes_accessed),
        ),
    )(*args)

    if trim:
        # Separate HBM copy; pass trim=False and slice/fuse at the consumer to
        # avoid re-streaming the whole lane-padded output.
        return out[:B, :out_dim]
    return out


# ---------------------------------------------------------------------------
# Pure-JAX reference (unpadded params) for a sanity check.
# ---------------------------------------------------------------------------
def _layer_norm_ref(x, gamma, beta, eps=1e-5):
    mu = jnp.mean(x, axis=-1, keepdims=True)
    var = jnp.mean((x - mu) ** 2, axis=-1, keepdims=True)
    return (x - mu) * jax.lax.rsqrt(var + eps) * gamma + beta


def up_three_layer_reference(x, p):
    f1 = _leaky_relu(x @ p["w11"] + p["b11"])
    f1 = _layer_norm_ref(f1, p["g1"], p["be1"])
    f2 = _leaky_relu(f1 @ p["w12"] + p["b12"])
    f3 = _layer_norm_ref(f2, p["g3"], p["be3"])
    f3 = _leaky_relu(f3 @ p["w13"] + p["b13"])
    return f3 @ p["w14"] + p["b14"]


if __name__ == "__main__":
    # Small shapes consistent with the module defaults (hid=64, hid2=32, hid3=100).
    B, in_dim, out_dim = 20, 16, 8
    hid, hid2, hid3 = 64, 32, 100

    key = jax.random.PRNGKey(0)
    kx, kp = jax.random.split(key)
    x = jax.random.normal(kx, (B, in_dim), jnp.float32)

    params = init_params(kp, in_dim, out_dim, hid=hid, hid2=hid2, hid3=hid3)
    padded_params = pad_params_for_tpu(params)
    ref = up_three_layer_reference(x, params)

    # tile_b=8 exercises the multi-step grid + batch-padding path at small B.
    out = up_three_layer_forward(x, padded_params, out_dim=out_dim,
                                 hid=hid, hid2=hid2, tile_b=8)
    out = jax.block_until_ready(out)
    assert out.shape == (B, out_dim)
    assert jnp.allclose(out, ref, atol=1e-4, rtol=1e-4), "mismatch vs reference"

    # Default (production) tile path: single 2048-capped tile, no batch padding waste.
    out2 = up_three_layer_forward(x, padded_params, out_dim=out_dim,
                                  hid=hid, hid2=hid2)
    out2 = jax.block_until_ready(out2)
    assert out2.shape == (B, out_dim)
    assert jnp.allclose(out2, ref, atol=1e-4, rtol=1e-4), "mismatch vs reference (default tile)"

    print("KERNEL_OK")
</pallas_src>

<mosaic_0001>
module attributes {stable_mosaic.version = 11 : i64} {
  func.func @up_three_layer_kernel(%arg0: i32, %arg1: memref<8x16xf32, #tpu.memory_space<vmem>>, %arg2: memref<16x128xf32, #tpu.memory_space<vmem>>, %arg3: memref<1x128xf32, #tpu.memory_space<vmem>>, %arg4: memref<1x128xf32, #tpu.memory_space<vmem>>, %arg5: memref<1x128xf32, #tpu.memory_space<vmem>>, %arg6: memref<128x128xf32, #tpu.memory_space<vmem>>, %arg7: memref<1x128xf32, #tpu.memory_space<vmem>>, %arg8: memref<1x128xf32, #tpu.memory_space<vmem>>, %arg9: memref<1x128xf32, #tpu.memory_space<vmem>>, %arg10: memref<128x128xf32, #tpu.memory_space<vmem>>, %arg11: memref<1x128xf32, #tpu.memory_space<vmem>>, %arg12: memref<128x128xf32, #tpu.memory_space<vmem>>, %arg13: memref<1x128xf32, #tpu.memory_space<vmem>>, %arg14: memref<8x128xf32, #tpu.memory_space<vmem>>) attributes {dimension_semantics = [#tpu.dimension_semantics<parallel>], iteration_bounds = array<i64: 3>, scalar_prefetch = 0 : i64, scratch_operands = 0 : i64, tpu.core_type = #tpu.core_type<tc>, window_params = [{transform_indices = @transform_0, window_bounds = array<i64: 8, 16>}, {pipeline_mode = #tpu.pipeline_mode<synchronous>, transform_indices = @transform_1, window_bounds = array<i64: 16, 128>}, {pipeline_mode = #tpu.pipeline_mode<synchronous>, transform_indices = @transform_2, window_bounds = array<i64: 1, 128>}, {pipeline_mode = #tpu.pipeline_mode<synchronous>, transform_indices = @transform_3, window_bounds = array<i64: 1, 128>}, {pipeline_mode = #tpu.pipeline_mode<synchronous>, transform_indices = @transform_4, window_bounds = array<i64: 1, 128>}, {pipeline_mode = #tpu.pipeline_mode<synchronous>, transform_indices = @transform_5, window_bounds = array<i64: 128, 128>}, {pipeline_mode = #tpu.pipeline_mode<synchronous>, transform_indices = @transform_6, window_bounds = array<i64: 1, 128>}, {pipeline_mode = #tpu.pipeline_mode<synchronous>, transform_indices = @transform_7, window_bounds = array<i64: 1, 128>}, {pipeline_mode = #tpu.pipeline_mode<synchronous>, transform_indices = @transform_8, window_bounds = array<i64: 1, 128>}, {pipeline_mode = #tpu.pipeline_mode<synchronous>, transform_indices = @transform_9, window_bounds = array<i64: 128, 128>}, {pipeline_mode = #tpu.pipeline_mode<synchronous>, transform_indices = @transform_10, window_bounds = array<i64: 1, 128>}, {pipeline_mode = #tpu.pipeline_mode<synchronous>, transform_indices = @transform_11, window_bounds = array<i64: 128, 128>}, {pipeline_mode = #tpu.pipeline_mode<synchronous>, transform_indices = @transform_12, window_bounds = array<i64: 1, 128>}, {transform_indices = @transform_13, window_bounds = array<i64: 8, 128>}]} {
    %c0 = arith.constant 0 : index
    %c0_0 = arith.constant 0 : index
    %0 = vector.load %arg1[%c0, %c0_0] : memref<8x16xf32, #tpu.memory_space<vmem>>, vector<8x16xf32>
    %c0_1 = arith.constant 0 : index
    %c0_2 = arith.constant 0 : index
    %1 = vector.load %arg2[%c0_1, %c0_2] : memref<16x128xf32, #tpu.memory_space<vmem>>, vector<16x128xf32>
    %cst = arith.constant dense<0.000000e+00> : vector<8x128xf32>
    %2 = tpu.matmul %0, %1, %cst {dimension_numbers = #tpu.dot_dimension_numbers<[1], [0], [0], [1], [0, 0, 1, 1], [], []>} : vector<8x16xf32>, vector<16x128xf32>, vector<8x128xf32> -> vector<8x128xf32>
    %c0_3 = arith.constant 0 : index
    %c0_4 = arith.constant 0 : index
    %3 = vector.load %arg3[%c0_3, %c0_4] : memref<1x128xf32, #tpu.memory_space<vmem>>, vector<1x128xf32>
    %4 = vector.broadcast %3 : vector<1x128xf32> to vector<8x128xf32>
    %5 = arith.addf %2, %4 : vector<8x128xf32>
    %cst_5 = arith.constant 0.000000e+00 : f32
    %6 = vector.broadcast %cst_5 : f32 to vector<8x128xf32>
    %7 = arith.cmpf oge, %5, %6 : vector<8x128xf32>
    %cst_6 = arith.constant 1.000000e-01 : f32
    %8 = vector.broadcast %cst_6 : f32 to vector<8x128xf32>
    %9 = arith.mulf %8, %5 : vector<8x128xf32>
    %10 = arith.select %7, %5, %9 : vector<8x128xi1>, vector<8x128xf32>
    %c0_7 = arith.constant 0 : index
    %c0_8 = arith.constant 0 : index
    %11 = vector.load %arg4[%c0_7, %c0_8] : memref<1x128xf32, #tpu.memory_space<vmem>>, vector<1x128xf32>
    %c0_9 = arith.constant 0 : index
    %c0_10 = arith.constant 0 : index
    %12 = vector.load %arg5[%c0_9, %c0_10] : memref<1x128xf32, #tpu.memory_space<vmem>>, vector<1x128xf32>
    %cst_11 = arith.constant dense<0.000000e+00> : vector<8xf32>
    %13 = vector.multi_reduction <add>, %10, %cst_11 [1] : vector<8x128xf32> to vector<8xf32>
    %14 = vector.shape_cast %13 : vector<8xf32> to vector<8x1xf32>
    %cst_12 = arith.constant 6.400000e+01 : f32
    %15 = vector.broadcast %cst_12 : f32 to vector<8x1xf32>
    %16 = arith.divf %14, %15 : vector<8x1xf32>
    %17 = vector.broadcast %16 : vector<8x1xf32> to vector<8x128xf32>
    %18 = arith.subf %10, %17 : vector<8x128xf32>
    %19 = arith.mulf %18, %18 : vector<8x128xf32>
    %cst_13 = arith.constant dense<0.000000e+00> : vector<8xf32>
    %20 = vector.multi_reduction <add>, %19, %cst_13 [1] : vector<8x128xf32> to vector<8xf32>
    %21 = vector.shape_cast %20 : vector<8xf32> to vector<8x1xf32>
    %cst_14 = arith.constant 6.400000e+01 : f32
    %22 = vector.broadcast %cst_14 : f32 to vector<8x1xf32>
    %23 = arith.mulf %22, %16 : vector<8x1xf32>
    %24 = arith.mulf %23, %16 : vector<8x1xf32>
    %25 = arith.subf %21, %24 : vector<8x1xf32>
    %cst_15 = arith.constant 6.400000e+01 : f32
    %26 = vector.broadcast %cst_15 : f32 to vector<8x1xf32>
    %27 = arith.divf %25, %26 : vector<8x1xf32>
    %cst_16 = arith.constant 9.99999974E-6 : f32
    %28 = vector.broadcast %cst_16 : f32 to vector<8x1xf32>
    %29 = arith.addf %27, %28 : vector<8x1xf32>
    %30 = math.rsqrt %29 : vector<8x1xf32>
    %31 = vector.broadcast %30 : vector<8x1xf32> to vector<8x128xf32>
    %32 = arith.mulf %18, %31 : vector<8x128xf32>
    %33 = vector.broadcast %11 : vector<1x128xf32> to vector<8x128xf32>
    %34 = arith.mulf %32, %33 : vector<8x128xf32>
    %35 = vector.broadcast %12 : vector<1x128xf32> to vector<8x128xf32>
    %36 = arith.addf %34, %35 : vector<8x128xf32>
    %c0_17 = arith.constant 0 : index
    %c0_18 = arith.constant 0 : index
    %37 = vector.load %arg6[%c0_17, %c0_18] : memref<128x128xf32, #tpu.memory_space<vmem>>, vector<128x128xf32>
    %cst_19 = arith.constant dense<0.000000e+00> : vector<8x128xf32>
    %38 = tpu.matmul %36, %37, %cst_19 {dimension_numbers = #tpu.dot_dimension_numbers<[1], [0], [0], [1], [0, 0, 1, 1], [], []>} : vector<8x128xf32>, vector<128x128xf32>, vector<8x128xf32> -> vector<8x128xf32>
    %c0_20 = arith.constant 0 : index
    %c0_21 = arith.constant 0 : index
    %39 = vector.load %arg7[%c0_20, %c0_21] : memref<1x128xf32, #tpu.memory_space<vmem>>, vector<1x128xf32>
    %40 = vector.broadcast %39 : vector<1x128xf32> to vector<8x128xf32>
    %41 = arith.addf %38, %40 : vector<8x128xf32>
    %cst_22 = arith.constant 0.000000e+00 : f32
    %42 = vector.broadcast %cst_22 : f32 to vector<8x128xf32>
    %43 = arith.cmpf oge, %41, %42 : vector<8x128xf32>
    %cst_23 = arith.constant 1.000000e-01 : f32
    %44 = vector.broadcast %cst_23 : f32 to vector<8x128xf32>
    %45 = arith.mulf %44, %41 : vector<8x128xf32>
    %46 = arith.select %43, %41, %45 : vector<8x128xi1>, vector<8x128xf32>
    %c0_24 = arith.constant 0 : index
    %c0_25 = arith.constant 0 : index
    %47 = vector.load %arg8[%c0_24, %c0_25] : memref<1x128xf32, #tpu.memory_space<vmem>>, vector<1x128xf32>
    %c0_26 = arith.constant 0 : index
    %c0_27 = arith.constant 0 : index
    %48 = vector.load %arg9[%c0_26, %c0_27] : memref<1x128xf32, #tpu.memory_space<vmem>>, vector<1x128xf32>
    %cst_28 = arith.constant dense<0.000000e+00> : vector<8xf32>
    %49 = vector.multi_reduction <add>, %46, %cst_28 [1] : vector<8x128xf32> to vector<8xf32>
    %50 = vector.shape_cast %49 : vector<8xf32> to vector<8x1xf32>
    %cst_29 = arith.constant 3.200000e+01 : f32
    %51 = vector.broadcast %cst_29 : f32 to vector<8x1xf32>
    %52 = arith.divf %50, %51 : vector<8x1xf32>
    %53 = vector.broadcast %52 : vector<8x1xf32> to vector<8x128xf32>
    %54 = arith.subf %46, %53 : vector<8x128xf32>
    %55 = arith.mulf %54, %54 : vector<8x128xf32>
    %cst_30 = arith.constant dense<0.000000e+00> : vector<8xf32>
    %56 = vector.multi_reduction <add>, %55, %cst_30 [1] : vector<8x128xf32> to vector<8xf32>
    %57 = vector.shape_cast %56 : vector<8xf32> to vector<8x1xf32>
    %cst_31 = arith.constant 9.600000e+01 : f32
    %58 = vector.broadcast %cst_31 : f32 to vector<8x1xf32>
    %59 = arith.mulf %58, %52 : vector<8x1xf32>
    %60 = arith.mulf %59, %52 : vector<8x1xf32>
    %61 = arith.subf %57, %60 : vector<8x1xf32>
    %cst_32 = arith.constant 3.200000e+01 : f32
    %62 = vector.broadcast %cst_32 : f32 to vector<8x1xf32>
    %63 = arith.divf %61, %62 : vector<8x1xf32>
    %cst_33 = arith.constant 9.99999974E-6 : f32
    %64 = vector.broadcast %cst_33 : f32 to vector<8x1xf32>
    %65 = arith.addf %63, %64 : vector<8x1xf32>
    %66 = math.rsqrt %65 : vector<8x1xf32>
    %67 = vector.broadcast %66 : vector<8x1xf32> to vector<8x128xf32>
    %68 = arith.mulf %54, %67 : vector<8x128xf32>
    %69 = vector.broadcast %47 : vector<1x128xf32> to vector<8x128xf32>
    %70 = arith.mulf %68, %69 : vector<8x128xf32>
    %71 = vector.broadcast %48 : vector<1x128xf32> to vector<8x128xf32>
    %72 = arith.addf %70, %71 : vector<8x128xf32>
    %c0_34 = arith.constant 0 : index
    %c0_35 = arith.constant 0 : index
    %73 = vector.load %arg10[%c0_34, %c0_35] : memref<128x128xf32, #tpu.memory_space<vmem>>, vector<128x128xf32>
    %cst_36 = arith.constant dense<0.000000e+00> : vector<8x128xf32>
    %74 = tpu.matmul %72, %73, %cst_36 {dimension_numbers = #tpu.dot_dimension_numbers<[1], [0], [0], [1], [0, 0, 1, 1], [], []>} : vector<8x128xf32>, vector<128x128xf32>, vector<8x128xf32> -> vector<8x128xf32>
    %c0_37 = arith.constant 0 : index
    %c0_38 = arith.constant 0 : index
    %75 = vector.load %arg11[%c0_37, %c0_38] : memref<1x128xf32, #tpu.memory_space<vmem>>, vector<1x128xf32>
    %76 = vector.broadcast %75 : vector<1x128xf32> to vector<8x128xf32>
    %77 = arith.addf %74, %76 : vector<8x128xf32>
    %cst_39 = arith.constant 0.000000e+00 : f32
    %78 = vector.broadcast %cst_39 : f32 to vector<8x128xf32>
    %79 = arith.cmpf oge, %77, %78 : vector<8x128xf32>
    %cst_40 = arith.constant 1.000000e-01 : f32
    %80 = vector.broadcast %cst_40 : f32 to vector<8x128xf32>
    %81 = arith.mulf %80, %77 : vector<8x128xf32>
    %82 = arith.select %79, %77, %81 : vector<8x128xi1>, vector<8x128xf32>
    %c0_41 = arith.constant 0 : index
    %c0_42 = arith.constant 0 : index
    %83 = vector.load %arg12[%c0_41, %c0_42] : memref<128x128xf32, #tpu.memory_space<vmem>>, vector<128x128xf32>
    %cst_43 = arith.constant dense<0.000000e+00> : vector<8x128xf32>
    %84 = tpu.matmul %82, %83, %cst_43 {dimension_numbers = #tpu.dot_dimension_numbers<[1], [0], [0], [1], [0, 0, 1, 1], [], []>} : vector<8x128xf32>, vector<128x128xf32>, vector<8x128xf32> -> vector<8x128xf32>
    %c0_44 = arith.constant 0 : index
    %c0_45 = arith.constant 0 : index
    %85 = vector.load %arg13[%c0_44, %c0_45] : memref<1x128xf32, #tpu.memory_space<vmem>>, vector<1x128xf32>
    %86 = vector.broadcast %85 : vector<1x128xf32> to vector<8x128xf32>
    %87 = arith.addf %84, %86 : vector<8x128xf32>
    %c0_46 = arith.constant 0 : index
    %c0_47 = arith.constant 0 : index
    %88 = vector.load %arg14[%c0_46, %c0_47] : memref<8x128xf32, #tpu.memory_space<vmem>>, vector<8x128xf32>
    tpu.vector_store %arg14[%c0_46, %c0_47], %87 {strides = array<i32>} : memref<8x128xf32, #tpu.memory_space<vmem>>, vector<8x128xf32>,
    return
  }
  func.func @transform_0(%arg0: i32) -> (i32, i32) {
    %c0_i32 = arith.constant 0 : i32
    %c0_i32_0 = arith.constant 0 : i32
    return %arg0, %c0_i32 : i32, i32
  }
  func.func @transform_1(%arg0: i32) -> (i32, i32) {
    %c0_i32 = arith.constant 0 : i32
    %c0_i32_0 = arith.constant 0 : i32
    %c0_i32_1 = arith.constant 0 : i32
    return %c0_i32, %c0_i32_0 : i32, i32
  }
  func.func @transform_2(%arg0: i32) -> (i32, i32) {
    %c0_i32 = arith.constant 0 : i32
    %c0_i32_0 = arith.constant 0 : i32
    %c0_i32_1 = arith.constant 0 : i32
    return %c0_i32, %c0_i32_0 : i32, i32
  }
  func.func @transform_3(%arg0: i32) -> (i32, i32) {
    %c0_i32 = arith.constant 0 : i32
    %c0_i32_0 = arith.constant 0 : i32
    %c0_i32_1 = arith.constant 0 : i32
    return %c0_i32, %c0_i32_0 : i32, i32
  }
  func.func @transform_4(%arg0: i32) -> (i32, i32) {
    %c0_i32 = arith.constant 0 : i32
    %c0_i32_0 = arith.constant 0 : i32
    %c0_i32_1 = arith.constant 0 : i32
    return %c0_i32, %c0_i32_0 : i32, i32
  }
  func.func @transform_5(%arg0: i32) -> (i32, i32) {
    %c0_i32 = arith.constant 0 : i32
    %c0_i32_0 = arith.constant 0 : i32
    %c0_i32_1 = arith.constant 0 : i32
    return %c0_i32, %c0_i32_0 : i32, i32
  }
  func.func @transform_6(%arg0: i32) -> (i32, i32) {
    %c0_i32 = arith.constant 0 : i32
    %c0_i32_0 = arith.constant 0 : i32
    %c0_i32_1 = arith.constant 0 : i32
    return %c0_i32, %c0_i32_0 : i32, i32
  }
  func.func @transform_7(%arg0: i32) -> (i32, i32) {
    %c0_i32 = arith.constant 0 : i32
    %c0_i32_0 = arith.constant 0 : i32
    %c0_i32_1 = arith.constant 0 : i32
    return %c0_i32, %c0_i32_0 : i32, i32
  }
  func.func @transform_8(%arg0: i32) -> (i32, i32) {
    %c0_i32 = arith.constant 0 : i32
    %c0_i32_0 = arith.constant 0 : i32
    %c0_i32_1 = arith.constant 0 : i32
    return %c0_i32, %c0_i32_0 : i32, i32
  }
  func.func @transform_9(%arg0: i32) -> (i32, i32) {
    %c0_i32 = arith.constant 0 : i32
    %c0_i32_0 = arith.constant 0 : i32
    %c0_i32_1 = arith.constant 0 : i32
    return %c0_i32, %c0_i32_0 : i32, i32
  }
  func.func @transform_10(%arg0: i32) -> (i32, i32) {
    %c0_i32 = arith.constant 0 : i32
    %c0_i32_0 = arith.constant 0 : i32
    %c0_i32_1 = arith.constant 0 : i32
    return %c0_i32, %c0_i32_0 : i32, i32
  }
  func.func @transform_11(%arg0: i32) -> (i32, i32) {
    %c0_i32 = arith.constant 0 : i32
    %c0_i32_0 = arith.constant 0 : i32
    %c0_i32_1 = arith.constant 0 : i32
    return %c0_i32, %c0_i32_0 : i32, i32
  }
  func.func @transform_12(%arg0: i32) -> (i32, i32) {
    %c0_i32 = arith.constant 0 : i32
    %c0_i32_0 = arith.constant 0 : i32
    %c0_i32_1 = arith.constant 0 : i32
    return %c0_i32, %c0_i32_0 : i32, i32
  }
  func.func @transform_13(%arg0: i32) -> (i32, i32) {
    %c0_i32 = arith.constant 0 : i32
    %c0_i32_0 = arith.constant 0 : i32
    return %arg0, %c0_i32 : i32, i32
  }
}

</mosaic_0001>

<bundles_post_ra>
// kernel: up_three_layer_forward.1
= control target key start
LH: loop header
LB: loop body
LE: loop exit
PB: predicated region body
PF: predicated region fallthrough
CT: control target
= control target key end

     0   :  { %s2244_s0 = inlined_call_operand.vmem [shape: f32[24,16], index: 0, kind: input, shape index: {}]   ;;  %s2245_s1 = inlined_call_operand.hbm [shape: f32[16,128], index: 1, kind: input, shape index: {}]   ;;  %s2246_s2 = inlined_call_operand.vmem [shape: f32[1,128], index: 2, kind: input, shape index: {}]   ;;  %s2247_s3 = inlined_call_operand.vmem [shape: f32[1,128], index: 3, kind: input, shape index: {}]   ;;  %s2248_s4 = inlined_call_operand.hbm [shape: f32[1,128], index: 4, kind: input, shape index: {}]   ;;  %s2249_s5 = inlined_call_operand.hbm [shape: f32[128,128], index: 5, kind: input, shape index: {}]   ;;  %s2250_s6 = inlined_call_operand.hbm [shape: f32[1,128], index: 6, kind: input, shape index: {}]   ;;  %s2251_s7 = inlined_call_operand.hbm [shape: f32[1,128], index: 7, kind: input, shape index: {}]   ;;  %s2252_s8 = inlined_call_operand.hbm [shape: f32[1,128], index: 8, kind: input, shape index: {}]   ;;  %s2253_s9 = inlined_call_operand.vmem [shape: f32[128,128], index: 9, kind: input, shape index: {}]   ;;  %s2254_s10 = inlined_call_operand.hbm [shape: f32[1,128], index: 10, kind: input, shape index: {}]   ;;  %s2255_s11 = inlined_call_operand.hbm [shape: f32[128,128], index: 11, kind: input, shape index: {}]   ;;  %s2256_s12 = inlined_call_operand.hbm [shape: f32[1,128], index: 12, kind: input, shape index: {}]   ;;  %s2257_s13 = inlined_call_operand.vmem [shape: f32[24,128], index: 13, kind: output, shape index: {}]  }
   0x1   :  { %2261 = sst [smem:[#allocation22_spill]] %s2248_s4 }
   0x2   :  { %2262 = sst [smem:[#allocation23_spill]] %s2250_s6 }
   0x3   :  { %2263 = sst [smem:[#allocation24_spill]] %s2252_s8 }
   0x4   :  { %18 = vsyncpa [#allocation3], 0 }
   0x5   :  { %19 = vsyncpa [#allocation5], 0 }
   0x6   :  { %20 = vsyncpa [#allocation8], 0 }
   0x7   :  { %21 = vsyncpa [#allocation11], 0 }
   0x8   :  { %22 = vsyncpa [#allocation14], 0  ;;  %s1880_s25 = smov 0  }
   0x9 LB: > { %2264 = sst [smem:[#allocation21_spill]] %s1794_s25  ;;  %s1796_s26 = smov [#allocation4]   ;;  %s1794_s25 = sphi %s1880_s25, %s28_s25  }
   0xa   : > { %s369_s27 = sshll.u32 %s1796_s26, 4  ;;  %s1886_s28 = sadd.s32 4294967295, %s1794_s25   ;;  %s1891_s27 = int_to_ptr.vmem [resolvable:$true] %s369_s27 }
   0xb   : > { %p1133_p0 = scmp.ge.s32.totalorder %s1794_s25, 1  ;;  %p337_p1 = scmp.lt.s32.totalorder %s1794_s25, 4 }
   0xc   : > { %p2259_p2 = scmp.eq.s32.totalorder %s1886_s28, 0  ;;  %s1797_s30 = smov [#allocation7]  }
   0xd   : > { %p1893_p3 = pnand %p1133_p0, %p337_p1  ;;  %s393_s14 = sshll.u32 %s1797_s30, 4  ;;  %s1899_s14 = int_to_ptr.vmem [resolvable:$true] %s393_s14 }
   0xe   : > { %s1798_s15 = smov [#allocation10]   ;;  %s1799_s18 = smov [#allocation13]  }
   0xf   : > { %s2265_s29 = scalar_select %p1893_p3, 1, 0 }
  0x10   : > { %p1444_p4 = pneg %p1893_p3  ;;  %s415_s16 = sshll.u32 %s1798_s15, 4  ;;  %s1907_s16 = int_to_ptr.vmem [resolvable:$true] %s415_s16 }
  0x11   : > { %s1909_s19 = sshll.u32 %s1799_s18, 4  ;;  %s2267_s4 = sld [smem:[#allocation22_spill]]  ;;  %s440_s19 = int_to_ptr.vmem [resolvable:$true] %s1909_s19 }
  0x12   : > { %p1903_p5 = pnand %p2259_p2, %p1444_p4 }
  0x14   : > { %p1919_p7 = pneg %p1903_p5 }
  0x17   : > { %s1516_s22 = scalar_lea.hbm %s2267_s4, 16 }
  0x18   : > { %p1517_p6 = scmp.ne.s32.totalorder %s2267_s4, %s1516_s22  ;;  %p1523_p10 = scmp.lt.u32.totalorder %s1516_s22, %s2267_s4 }
  0x1a   : > { %p1519_p8 = pnand %p1919_p7, %p1517_p6 }
  0x1c   : > { %p1520_p9 = pneg %p1519_p8 }
  0x1e   : > { %p1525_p11 = pnand %p1523_p10, %p1520_p9 }
  0x20   : > { %1528 = shalt.err (!%p1525_p11)
}
  0x21   : > { %s1529_s18 = scalar_lea.vmem %s1891_s27, 16  ;;  %s1536_s20 = scalar_lea.vmem %s1891_s27, 32 }
  0x22   : > { %p1530_p12 = scmp.ne.s32.totalorder %s1891_s27, %s1529_s18  ;;  %p1537_p1 = scmp.lt.s32.totalorder %s1891_s27, %s1891_s27 }
  0x23   : > { %p1538_p4 = scmp.lt.s32.totalorder %s1536_s20, %s1529_s18 }
  0x24   : > { %p1532_p13 = pnand %p1530_p12, %p1919_p7 }
  0x25   : > { %p1539_p6 = por %p1538_p4, %p1537_p1 }
  0x26   : > { %p1533_p0 = pneg %p1532_p13 }
  0x28   : > { %p1540_p8 = pnand %p1539_p6, %p1533_p0 }
  0x2a   : > { %1543 = shalt.err (!%p1540_p8)
}
  0x2b   : > { %1450 = dma.hbm_to_vmem [thread:$0]  (!%p1903_p5), %s2267_s4, 16, %s1891_s27, [#allocation5]  }
  0x2c   : > { %s2269_s6 = sld [smem:[#allocation23_spill]] }
  0x32   : > { %s1544_s30 = scalar_lea.hbm %s2269_s6, 16 }
  0x33   : > { %p1545_p9 = scmp.ne.s32.totalorder %s2269_s6, %s1544_s30  ;;  %p1551_p12 = scmp.lt.u32.totalorder %s1544_s30, %s2269_s6 }
  0x35   : > { %p1547_p10 = pnand %p1545_p9, %p1919_p7 }
  0x37   : > { %p1548_p11 = pneg %p1547_p10 }
  0x39   : > { %p1553_p13 = pnand %p1551_p12, %p1548_p11 }
  0x3b   : > { %1556 = shalt.err (!%p1553_p13)
}
  0x3c   : > { %s1557_s27 = scalar_lea.vmem %s1899_s14, 16  ;;  %s1564_s25 = scalar_lea.vmem %s1899_s14, 32 }
  0x3d   : > { %p1558_p0 = scmp.ne.s32.totalorder %s1899_s14, %s1557_s27  ;;  %p1565_p6 = scmp.lt.s32.totalorder %s1899_s14, %s1899_s14 }
  0x3e   : > { %p1566_p8 = scmp.lt.s32.totalorder %s1564_s25, %s1557_s27 }
  0x3f   : > { %p1560_p1 = pnand %p1558_p0, %p1919_p7 }
  0x40   : > { %p1567_p9 = por %p1566_p8, %p1565_p6 }
  0x41   : > { %p1561_p4 = pneg %p1560_p1 }
  0x43   : > { %p1568_p10 = pnand %p1567_p9, %p1561_p4 }
  0x45   : > { %1571 = shalt.err (!%p1568_p10)
}
  0x46   : > { %1456 = dma.hbm_to_vmem [thread:$0]  (!%p1903_p5), %s2269_s6, 16, %s1899_s14, [#allocation8]  }
  0x47   : > { %s2270_s8 = sld [smem:[#allocation24_spill]] }
  0x4d   : > { %s1572_s30 = scalar_lea.hbm %s2270_s8, 16 }
  0x4e   : > { %p1573_p11 = scmp.ne.s32.totalorder %s2270_s8, %s1572_s30  ;;  %p1579_p0 = scmp.lt.u32.totalorder %s1572_s30, %s2270_s8 }
  0x50   : > { %p1575_p12 = pnand %p1573_p11, %p1919_p7 }
  0x52   : > { %p1576_p13 = pneg %p1575_p12 }
  0x54   : > { %p1581_p1 = pnand %p1579_p0, %p1576_p13 }
  0x56   : > { %1584 = shalt.err (!%p1581_p1)
}
  0x57   : > { %s1585_s14 = scalar_lea.vmem %s1907_s16, 16  ;;  %s1592_s25 = scalar_lea.vmem %s1907_s16, 32 }
  0x58   : > { %p1586_p4 = scmp.ne.s32.totalorder %s1907_s16, %s1585_s14  ;;  %p1593_p9 = scmp.lt.s32.totalorder %s1907_s16, %s1907_s16 }
  0x59   : > { %p1594_p10 = scmp.lt.s32.totalorder %s1592_s25, %s1585_s14 }
  0x5a   : > { %p1588_p6 = pnand %p1586_p4, %p1919_p7 }
  0x5b   : > { %p1595_p11 = por %p1594_p10, %p1593_p9 }
  0x5c   : > { %p1589_p8 = pneg %p1588_p6 }
  0x5e   : > { %p1596_p12 = pnand %p1595_p11, %p1589_p8 }
  0x60   : > { %1599 = shalt.err (!%p1596_p12)
}
  0x61   : > { %1462 = dma.hbm_to_vmem [thread:$0]  (!%p1903_p5), %s2270_s8, 16, %s1907_s16, [#allocation11]  }
  0x62   : > { %s1600_s30 = scalar_lea.hbm %s2255_s11, 2048 }
  0x63   : > { %p1601_p13 = scmp.ne.s32.totalorder %s2255_s11, %s1600_s30  ;;  %p1607_p4 = scmp.lt.u32.totalorder %s1600_s30, %s2255_s11 }
  0x65   : > { %p1603_p0 = pnand %p1601_p13, %p1919_p7 }
  0x67   : > { %p1604_p1 = pneg %p1603_p0 }
  0x69   : > { %p1609_p6 = pnand %p1607_p4, %p1604_p1 }
  0x6b   : > { %1612 = shalt.err (!%p1609_p6)
}
  0x6c   : > { %s1613_s14 = scalar_lea.vmem %s440_s19, 2048  ;;  %p1621_p11 = scmp.lt.s32.totalorder %s440_s19, %s440_s19 }
  0x6d   : > { %p1614_p8 = scmp.ne.s32.totalorder %s440_s19, %s1613_s14  ;;  %p1622_p12 = scmp.lt.s32.totalorder %s1613_s14, %s1613_s14 }
  0x6f   : > { %p1616_p9 = pnand %p1614_p8, %p1919_p7  ;;  %p1623_p2 = por %p1622_p12, %p1621_p11 }
  0x71   : > { %p1617_p10 = pneg %p1616_p9 }
  0x73   : > { %p1624_p3 = pnand %p1623_p2, %p1617_p10 }
  0x75   : > { %1627 = shalt.err (!%p1624_p3)
}
  0x76   : > { %s1800_s16 = smov 128   ;;  %s1801_s25 = smov 8  }
  0x77   : > { %1468 = dma.hbm_to_vmem [thread:$0]  (!%p1903_p5), %s2255_s11, 2048, %s440_s19, [#allocation14], %s1800_s16, %s1800_s16, %s1801_s25  }
  0x78   : > { %s1802_s23 = smov [#allocation2]   ;;  %s1803_s30 = smov [#allocation6]  }
  0x79   : > { %s349_s24 = sshll.u32 %s1802_s23, 4  ;;  %s379_s15 = sshll.u32 %s1803_s30, 4  ;;  %s350_s24 = int_to_ptr.vmem [resolvable:$true] %s349_s24  ;;  %s380_s15 = int_to_ptr.vmem [resolvable:$true] %s379_s15 }
  0x7a   : > { %s1628_s27 = scalar_lea.hbm %s2245_s1, 256 }
  0x7b   : > { %p1629_p2 = scmp.ne.s32.totalorder %s2245_s1, %s1628_s27  ;;  %p1635_p0 = scmp.lt.u32.totalorder %s1628_s27, %s2245_s1 }
  0x7d   : > { %p1631_p3 = pnand %p1629_p2, %p1919_p7 }
  0x7f   : > { %p1632_p13 = pneg %p1631_p3 }
  0x81   : > { %p1637_p1 = pnand %p1635_p0, %p1632_p13 }
  0x83   : > { %1640 = shalt.err (!%p1637_p1)
}
  0x84   : > { %s1641_s19 = scalar_lea.vmem %s350_s24, 256  ;;  %p1649_p9 = scmp.lt.s32.totalorder %s350_s24, %s350_s24 }
  0x85   : > { %p1642_p4 = scmp.ne.s32.totalorder %s350_s24, %s1641_s19  ;;  %p1650_p10 = scmp.lt.s32.totalorder %s1641_s19, %s1641_s19 }
  0x87   : > { %p1644_p6 = pnand %p1642_p4, %p1919_p7  ;;  %p1651_p11 = por %p1650_p10, %p1649_p9 }
  0x89   : > { %p1645_p8 = pneg %p1644_p6 }
  0x8b   : > { %p1652_p12 = pnand %p1651_p11, %p1645_p8 }
  0x8d   : > { %1655 = shalt.err (!%p1652_p12)
}
  0x8e   : > { %1447 = dma.hbm_to_vmem [thread:$0]  (!%p1903_p5), %s2245_s1, 256, %s350_s24, [#allocation3], %s1800_s16, %s1800_s16, %s1801_s25  }
  0x8f   : > { %s1656_s22 = scalar_lea.hbm %s2249_s5, 2048 }
  0x90   : > { %p1657_p2 = scmp.ne.s32.totalorder %s2249_s5, %s1656_s22  ;;  %p1663_p0 = scmp.lt.u32.totalorder %s1656_s22, %s2249_s5 }
  0x92   : > { %p1659_p3 = pnand %p1657_p2, %p1919_p7 }
  0x94   : > { %p1660_p13 = pneg %p1659_p3 }
  0x96   : > { %p1665_p1 = pnand %p1663_p0, %p1660_p13 }
  0x98   : > { %1668 = shalt.err (!%p1665_p1)
}
  0x99   : > { %s1669_s27 = scalar_lea.vmem %s380_s15, 2048  ;;  %p1677_p9 = scmp.lt.s32.totalorder %s380_s15, %s380_s15 }
  0x9a   : > { %p1670_p4 = scmp.ne.s32.totalorder %s380_s15, %s1669_s27  ;;  %p1678_p10 = scmp.lt.s32.totalorder %s1669_s27, %s1669_s27 }
  0x9c   : > { %p1672_p6 = pnand %p1670_p4, %p1919_p7  ;;  %p1679_p11 = por %p1678_p10, %p1677_p9 }
  0x9e   : > { %p1673_p8 = pneg %p1672_p6 }
  0xa0   : > { %p1680_p12 = pnand %p1679_p11, %p1673_p8 }
  0xa2   : > { %1683 = shalt.err (!%p1680_p12)
}
  0xa3   : > { %1453 = dma.hbm_to_vmem [thread:$0]  (!%p1903_p5), %s2249_s5, 2048, %s380_s15, [#allocation5], %s1800_s16, %s1800_s16, %s1801_s25  }
  0xa4   : > { %s1804_s19 = smov [#allocation9]   ;;  %s1805_s6 = smov [#allocation12]  }
  0xa5   : > { %s404_s4 = sshll.u32 %s1804_s19, 4  ;;  %s429_s8 = sshll.u32 %s1805_s6, 4  ;;  %s405_s4 = int_to_ptr.vmem [resolvable:$true] %s404_s4  ;;  %s430_s8 = int_to_ptr.vmem [resolvable:$true] %s429_s8 }
  0xa6   : > { %s1684_s23 = scalar_lea.hbm %s2251_s7, 16 }
  0xa7   : > { %p1685_p2 = scmp.ne.s32.totalorder %s2251_s7, %s1684_s23  ;;  %p1691_p0 = scmp.lt.u32.totalorder %s1684_s23, %s2251_s7 }
  0xa9   : > { %p1687_p3 = pnand %p1685_p2, %p1919_p7 }
  0xab   : > { %p1688_p13 = pneg %p1687_p3 }
  0xad   : > { %p1693_p1 = pnand %p1691_p0, %p1688_p13 }
  0xaf   : > { %1696 = shalt.err (!%p1693_p1)
}
  0xb0   : > { %s1697_s16 = scalar_lea.vmem %s405_s4, 16  ;;  %s1704_s25 = scalar_lea.vmem %s405_s4, 32 }
  0xb1   : > { %p1698_p4 = scmp.ne.s32.totalorder %s405_s4, %s1697_s16  ;;  %p1705_p9 = scmp.lt.s32.totalorder %s405_s4, %s405_s4 }
  0xb2   : > { %p1706_p10 = scmp.lt.s32.totalorder %s1704_s25, %s1697_s16 }
  0xb3   : > { %p1700_p6 = pnand %p1698_p4, %p1919_p7 }
  0xb4   : > { %p1707_p11 = por %p1706_p10, %p1705_p9 }
  0xb5   : > { %p1701_p8 = pneg %p1700_p6 }
  0xb7   : > { %p1708_p12 = pnand %p1707_p11, %p1701_p8 }
  0xb9   : > { %1711 = shalt.err (!%p1708_p12)
}
  0xba   : > { %1459 = dma.hbm_to_vmem [thread:$0]  (!%p1903_p5), %s2251_s7, 16, %s405_s4, [#allocation8]  }
  0xbb   : > { %s1712_s6 = scalar_lea.hbm %s2254_s10, 16 }
  0xbc   : > { %p1713_p2 = scmp.ne.s32.totalorder %s2254_s10, %s1712_s6  ;;  %p1719_p0 = scmp.lt.u32.totalorder %s1712_s6, %s2254_s10 }
  0xbe   : > { %p1715_p3 = pnand %p1713_p2, %p1919_p7 }
  0xc0   : > { %p1716_p13 = pneg %p1715_p3 }
  0xc2   : > { %p1721_p1 = pnand %p1719_p0, %p1716_p13 }
  0xc4   : > { %1724 = shalt.err (!%p1721_p1)
}
  0xc5   : > { %s1725_s18 = scalar_lea.vmem %s430_s8, 16  ;;  %s1732_s4 = scalar_lea.vmem %s430_s8, 32 }
  0xc6   : > { %p1726_p4 = scmp.ne.s32.totalorder %s430_s8, %s1725_s18  ;;  %p1733_p9 = scmp.lt.s32.totalorder %s430_s8, %s430_s8 }
  0xc7   : > { %p1734_p10 = scmp.lt.s32.totalorder %s1732_s4, %s1725_s18 }
  0xc8   : > { %p1728_p6 = pnand %p1726_p4, %p1919_p7 }
  0xc9   : > { %p1735_p11 = por %p1734_p10, %p1733_p9 }
  0xca   : > { %p1729_p8 = pneg %p1728_p6 }
  0xcc   : > { %p1736_p12 = pnand %p1735_p11, %p1729_p8 }
  0xce   : > { %1739 = shalt.err (!%p1736_p12)
}
  0xcf   : > { %1465 = dma.hbm_to_vmem [thread:$0]  (!%p1903_p5), %s2254_s10, 16, %s430_s8, [#allocation11]  }
  0xd0   : > { %s1806_s16 = smov [#allocation15]   ;;  %s1740_s14 = scalar_lea.hbm %s2256_s12, 16 }
  0xd1   : > { %s453_s25 = sshll.u32 %s1806_s16, 4  ;;  %p1741_p2 = scmp.ne.s32.totalorder %s2256_s12, %s1740_s14  ;;  %s454_s25 = int_to_ptr.vmem [resolvable:$true] %s453_s25 }
  0xd2   : > { %p1747_p0 = scmp.lt.u32.totalorder %s1740_s14, %s2256_s12 }
  0xd3   : > { %p1743_p3 = pnand %p1741_p2, %p1919_p7 }
  0xd5   : > { %p1744_p13 = pneg %p1743_p3 }
  0xd7   : > { %p1749_p1 = pnand %p1747_p0, %p1744_p13 }
  0xd9   : > { %1752 = shalt.err (!%p1749_p1)
}
  0xda   : > { %s1753_s8 = scalar_lea.vmem %s454_s25, 16  ;;  %s1760_s23 = scalar_lea.vmem %s454_s25, 32 }
  0xdb   : > { %p1754_p4 = scmp.ne.s32.totalorder %s454_s25, %s1753_s8  ;;  %p1761_p9 = scmp.lt.s32.totalorder %s454_s25, %s454_s25 }
  0xdc   : > { %p1762_p10 = scmp.lt.s32.totalorder %s1760_s23, %s1753_s8 }
  0xdd   : > { %p1756_p6 = pnand %p1754_p4, %p1919_p7 }
  0xde   : > { %p1763_p11 = por %p1762_p10, %p1761_p9 }
  0xdf   : > { %p1757_p8 = pneg %p1756_p6 }
  0xe1   : > { %p1764_p12 = pnand %p1763_p11, %p1757_p8 }
  0xe3   : > { %1767 = shalt.err (!%p1764_p12)
}
  0xe4   : > { %1471 = dma.hbm_to_vmem [thread:$0]  (!%p1903_p5), %s2256_s12, 16, %s454_s25, [#allocation14]  }
  0xe5   : > { %p2271_p2 = scmp.ne.s32.totalorder %s2265_s29, 0 }
  0xe6   : > { %p2272_p3 = scmp.eq.s32.totalorder (!%p2271_p2), %s1886_s28, 0 }
  0xe7   : > { %473 = sbr.rel (%p2271_p2) target bundleno = 1751 (0x6d7), region = 72 }
  0xee   : > { %1773 = dma.done.wait (%p2272_p3), [#allocation3], 256   ;;  %p2273_p7 = pmov %p2272_p3 }
  0xef   : > { %p2274_p13 = pmov %p2272_p3 }
  0xf0   : > { %1775 = vsyncadd (%p2273_p7), [#allocation3], 4294967040 }
  0xf1   : > { %1777 = dma.done.wait (%p2274_p13), [#allocation5], 2064   ;;  %p2275_p0 = pmov %p2272_p3 }
  0xf3   : > { %1779 = vsyncadd (%p2275_p0), [#allocation5], 4294965232  ;;  %p2276_p1 = pmov %p2275_p0 }
  0xf4   : > { %p2277_p5 = pmov %p2275_p0 }
  0xf5   : > { %1781 = dma.done.wait (%p2276_p1), [#allocation8], 32  }
  0xf6   : > { %1783 = vsyncadd (%p2277_p5), [#allocation8], 4294967264  ;;  %p2278_p4 = pmov %p2275_p0 }
  0xf7   : > { %p2279_p6 = pmov %p2275_p0 }
  0xf8   : > { %1785 = dma.done.wait (%p2278_p4), [#allocation11], 32  }
  0xf9   : > { %1787 = vsyncadd (%p2279_p6), [#allocation11], 4294967264  ;;  %p2280_p8 = pmov %p2275_p0 }
  0xfa   : > { %p2281_p9 = pmov %p2275_p0 }
  0xfb   : > { %1789 = dma.done.wait (%p2280_p8), [#allocation14], 2064  }
  0xfc   : > { %1791 = vsyncadd (%p2281_p9), [#allocation14], 4294965232  ;;  %p547_p10 = scmp.lt.s32.totalorder %s1886_s28, 2  ;;  %v1807_v0 = vmov 0.0|0.0   ;;  %vm1808_vm0 = vmmov 0   ;;  %v1809_v1 = vmov 0.0  }
  0xfd   : > { %1333 = vmatprep.subr.bf16.mxu0 %v1807_v0  ;;  %1225 = vmatprep.mubr.msk.f32.mxu0 %vm1808_vm0, %v1809_v1  ;;  %v556_v2 = vld [vmem:[#allocation2] sm:$0xff]  ;;  %v557_v3 = vld [vmem:[#allocation2 + $0x8] sm:$0xff]  ;;  %vm565_vm1 = vcmask 130048   ;;  %v673_v12 = vld [vmem:[#allocation6] sm:$0xff] }
  0xfe   : > { %s2284_s28 = smov (!%p547_p10, %s1886_s28), 2  ;;  %1336 = vmatprep.subr.bf16.mxu1 %v1807_v0  ;;  %1260 = vmatprep.mubr.msk.f32.mxu1 %vm1808_vm0, %v1809_v1  ;;  %v1334_v4 = vpack.c.bf16 %v557_v3, %v556_v2  ;;  %v1156_v6 = vld [vmem:[%s2246_s2] ss:$0 sm:$0xff]  ;;  %v675_v14 = vld [vmem:[#allocation6 + $0x10] sm:$0xff]  ;;  %v676_v16 = vld [vmem:[#allocation6 + $0x18] sm:$0xff] }
  0xff   : > { %s1154_s29 = sshll.u32 %s2284_s28, 3  ;;  %v674_v13 = vld [vmem:[#allocation6 + $0x8] sm:$0xff]  ;;  %v1340_v17 = vpack.c.bf16 %v676_v16, %v675_v14  ;;  %v677_v22 = vld [vmem:[#allocation6 + $0x20] sm:$0xff]  ;;  %v679_v25 = vld [vmem:[#allocation6 + $0x30] sm:$0xff] }
 0x100   : > { %s550_s4 = scalar_lea.vmem %s2244_s0, %s1154_s29  ;;  %1335 = vmatpush3.bf16.msra.mxu0 %v1334_v4  ;;  %v1337_v15 = vpack.c.bf16 %v674_v13, %v673_v12  ;;  %v678_v23 = vld [vmem:[#allocation6 + $0x28] sm:$0xff]  ;;  %v680_v26 = vld [vmem:[#allocation6 + $0x38] sm:$0xff]  ;;  %v681_v28 = vld [vmem:[#allocation6 + $0x40] sm:$0xff]  ;;  %s554_s16 = scalar_lea.vmem %s2257_s13, %s1154_s29 }
 0x101   : > { %v555_v5 = vld [vmem:[%s550_s4] sm:$0xff]  ;;  %1360 = vmatprep.subr.bf16.mxu0 %v1807_v0  ;;  %v1343_v24 = vpack.c.bf16 %v678_v23, %v677_v22  ;;  %v1346_v27 = vpack.c.bf16 %v680_v26, %v679_v25  ;;  %v684_v32 = vld [vmem:[#allocation6 + $0x58] sm:$0xff]  ;;  %v685_v34 = vld [vmem:[#allocation6 + $0x60] sm:$0xff] }
 0x102   : > { %1338 = vmatpush3.bf16.msra.mxu1 %v1337_v15  ;;  %v682_v29 = vld [vmem:[#allocation6 + $0x48] sm:$0xff]  ;;  %v683_v31 = vld [vmem:[#allocation6 + $0x50] sm:$0xff]  ;;  %v688_v38 = vld [vmem:[#allocation6 + $0x78] sm:$0xff] }
 0x103   : > { %1226 = vmatmul.mubr.msk.f32.vlgmr.msra.gmra.mrb[0].mxu0 %vm565_vm1, %v555_v5  ;;  %1339 = vmatprep.subr.bf16.mxu1 %v1807_v0  ;;  %v1349_v30 = vpack.c.bf16 %v682_v29, %v681_v28  ;;  %v1352_v33 = vpack.c.bf16 %v684_v32, %v683_v31  ;;  %v686_v35 = vld [vmem:[#allocation6 + $0x68] sm:$0xff]  ;;  %v687_v37 = vld [vmem:[#allocation6 + $0x70] sm:$0xff]  ;;  %v1159_v49 = vld [vmem:[#allocation4] ss:$0 sm:$0xff] }
 0x104   : > { %1295 = vmatprep.mubr.msk.f32.mxu0 %vm1808_vm0, %v1809_v1  ;;  %v1355_v36 = vpack.c.bf16 %v686_v35, %v685_v34  ;;  %v1358_v39 = vpack.c.bf16 %v688_v38, %v687_v37  ;;  %v1158_v47 = vld [vmem:[%s2247_s3] ss:$0 sm:$0xff]  ;;  %v1160_v52 = vld [vmem:[#allocation7] ss:$0 sm:$0xff]  ;;  %v801_v59 = vld [vmem:[%s2253_s9 + $0x8] sm:$0xff] }
 0x105   : > { %v800_v58 = vld [vmem:[%s2253_s9] sm:$0xff]  ;;  %v802_v60 = vld [vmem:[%s2253_s9 + $0x10] sm:$0xff]  ;;  %v803_v62 = vld [vmem:[%s2253_s9 + $0x18] sm:$0xff] }
 0x106   : > { %1341 = vmatpush3.bf16.msra.mxu1 %v1340_v17  ;;  %v1361_v61 = vpack.c.bf16 %v801_v59, %v800_v58  ;;  %v1364_v63 = vpack.c.bf16 %v803_v62, %v802_v60  ;;  %v804_v5 = vld [vmem:[%s2253_s9 + $0x20] sm:$0xff]  ;;  %v809_v12 = vld [vmem:[%s2253_s9 + $0x48] sm:$0xff]  ;;  %v810_v14 = vld [vmem:[%s2253_s9 + $0x50] sm:$0xff] }
 0x107   : > { %1342 = vmatprep.subr.bf16.mxu1 %v1807_v0  ;;  %v811_v15 = vld [vmem:[%s2253_s9 + $0x58] sm:$0xff]  ;;  %v812_v17 = vld [vmem:[%s2253_s9 + $0x60] sm:$0xff]  ;;  %v898_v25 = vld [vmem:[#allocation13 + $0x10] sm:$0xff] }
 0x108   : > { %1362 = vmatpush3.bf16.msra.mxu0 %v1361_v61  ;;  %v1376_v16 = vpack.c.bf16 %v811_v15, %v810_v14  ;;  %v896_v23 = vld [vmem:[#allocation13] sm:$0xff]  ;;  %v902_v32 = vld [vmem:[#allocation13 + $0x30] sm:$0xff]  ;;  %v1163_v58 = vld [vmem:[#allocation12] ss:$0 sm:$0xff] }
 0x109   : > { %1363 = vmatprep.subr.bf16.mxu0 %v1807_v0  ;;  %v900_v29 = vld [vmem:[#allocation13 + $0x20] sm:$0xff]  ;;  %v906_v38 = vld [vmem:[#allocation13 + $0x50] sm:$0xff] }
 0x10a   : > { %1344 = vmatpush3.bf16.msra.mxu1 %v1343_v24  ;;  %v897_v24 = vld [vmem:[#allocation13 + $0x8] sm:$0xff]  ;;  %v904_v35 = vld [vmem:[#allocation13 + $0x40] sm:$0xff] }
 0x10b   : > { %1345 = vmatprep.subr.bf16.mxu1 %v1807_v0  ;;  %v1385_v26 = vpack.c.bf16 %v897_v24, %v896_v23 }
 0x10c   : > { %1365 = vmatpush3.bf16.msra.mxu0 %v1364_v63 }
 0x10d   : > { %1366 = vmatprep.subr.bf16.mxu0 %v1807_v0 }
 0x10e   : > { %1347 = vmatpush3.bf16.msra.mxu1 %v1346_v27  ;;  %v899_v27 = vld [vmem:[#allocation13 + $0x18] sm:$0xff] }
 0x10f   : > { %1348 = vmatprep.subr.bf16.mxu1 %v1807_v0  ;;  %v1388_v28 = vpack.c.bf16 %v899_v27, %v898_v25 }
 0x112   : > { %1350 = vmatpush3.bf16.msra.mxu1 %v1349_v30  ;;  %v901_v30 = vld [vmem:[#allocation13 + $0x28] sm:$0xff] }
 0x113   : > { %1351 = vmatprep.subr.bf16.mxu1 %v1807_v0  ;;  %v1391_v31 = vpack.c.bf16 %v901_v30, %v900_v29 }
 0x116   : > { %1353 = vmatpush3.bf16.msra.mxu1 %v1352_v33  ;;  %v903_v33 = vld [vmem:[#allocation13 + $0x38] sm:$0xff] }
 0x117   : > { %1354 = vmatprep.subr.bf16.mxu1 %v1807_v0  ;;  %v1394_v34 = vpack.c.bf16 %v903_v33, %v902_v32 }
 0x11a   : > { %1356 = vmatpush3.bf16.msra.mxu1 %v1355_v36  ;;  %v905_v36 = vld [vmem:[#allocation13 + $0x48] sm:$0xff] }
 0x11b   : > { %1357 = vmatprep.subr.bf16.mxu1 %v1807_v0  ;;  %v1397_v37 = vpack.c.bf16 %v905_v36, %v904_v35 }
 0x11e   : > { %1359 = vmatpush3.bf16.msra.mxu1 %v1358_v39  ;;  %v907_v39 = vld [vmem:[#allocation13 + $0x58] sm:$0xff] }
 0x11f   : > { %1384 = vmatprep.subr.bf16.mxu1 %v1807_v0 }
 0x1d6   : > { %v635_v7 = vpop.f32.mrb[0].mxu0 }
 0x1d7   : > { %v636_v8 = vadd.f32 %v1156_v6, %v635_v7  ;;  %v1227_v9 = vpop.f32.mrb[1].mxu0  ;;  %v805_v6 = vld [vmem:[%s2253_s9 + $0x28] sm:$0xff] }
 0x1d8   : > { %v1367_v7 = vpack.c.bf16 %v805_v6, %v804_v5  ;;  %v807_v9 = vld [vmem:[%s2253_s9 + $0x38] sm:$0xff] }
 0x1d9   : > { %vm639_vm2 = vcmp.ge.f32.partialorder %v636_v8, 0.0  ;;  %v640_v10 = vmul.f32 0.1, %v636_v8 }
 0x1da   : > { %1368 = vmatpush3.bf16.msra.mxu0 %v1367_v7 }
 0x1db   : > { %v641_v11 = vsel %vm639_vm2, %v636_v8, %v640_v10  ;;  %1369 = vmatprep.subr.bf16.mxu0 %v1807_v0  ;;  %v806_v8 = vld [vmem:[%s2253_s9 + $0x30] sm:$0xff] }
 0x1dc   : > { %644 = vadd.xlane.f32.xlu0 %v641_v11  ;;  %v1370_v10 = vpack.c.bf16 %v807_v9, %v806_v8 }
 0x1de   : > { %1371 = vmatpush3.bf16.msra.mxu0 %v1370_v10 }
 0x1df   : > { %1372 = vmatprep.subr.bf16.mxu0 %v1807_v0 }
 0x269   : > { %v645_v18 = vpop.xlane.xlu0 %644 }
 0x26a   : > { %v647_v19 = vmul.f32 0.015625, %v645_v18  ;;  %v813_v18 = vld [vmem:[%s2253_s9 + $0x68] sm:$0xff] }
 0x26c   : > { %v648_v20 = vsub.f32 %v641_v11, %v647_v19  ;;  %v652_v40 = vmul.f32 64.0, %v647_v19  ;;  %v808_v11 = vld [vmem:[%s2253_s9 + $0x40] sm:$0xff] }
 0x26d   : > { %v1373_v13 = vpack.c.bf16 %v809_v12, %v808_v11 }
 0x26e   : > { %v649_v21 = vmul.f32 %v648_v20, %v648_v20  ;;  %v653_v41 = vmul.f32 %v652_v40, %v647_v19  ;;  %v1379_v19 = vpack.c.bf16 %v813_v18, %v812_v17  ;;  %v1400_v40 = vpack.c.bf16 %v907_v39, %v906_v38 }
 0x26f   : > { %1374 = vmatpush3.bf16.msra.mxu0 %v1373_v13 }
 0x270   : > { %650 = vadd.xlane.f32.xlu0 %v649_v21  ;;  %1375 = vmatprep.subr.bf16.mxu0 %v1807_v0  ;;  %v815_v21 = vld [vmem:[%s2253_s9 + $0x78] sm:$0xff] }
 0x273   : > { %1377 = vmatpush3.bf16.msra.mxu0 %v1376_v16 }
 0x274   : > { %1378 = vmatprep.subr.bf16.mxu0 %v1807_v0 }
 0x277   : > { %1380 = vmatpush3.bf16.msra.mxu0 %v1379_v19 }
 0x278   : > { %1381 = vmatprep.subr.bf16.mxu0 %v1807_v0 }
 0x2fd   : > { %v651_v42 = vpop.xlane.xlu0 %650 }
 0x2fe   : > { %v654_v43 = vsub.f32 %v651_v42, %v653_v41  ;;  %v908_v41 = vld [vmem:[#allocation13 + $0x60] sm:$0xff]  ;;  %v909_v42 = vld [vmem:[#allocation13 + $0x68] sm:$0xff] }
 0x300   : > { %v655_v44 = vmul.f32 0.015625, %v654_v43  ;;  %v1403_v43 = vpack.c.bf16 %v909_v42, %v908_v41 }
 0x302   : > { %v656_v45 = vadd.f32 1e-05, %v655_v44 }
 0x304   : > { %1512 = vrsqrt.f32 %v656_v45 }
 0x30e   : > { %v1513_v46 = vpop.eup %1512 }
 0x30f   : > { %v658_v48 = vmul.f32 %v1513_v46, %v648_v20  ;;  %v814_v20 = vld [vmem:[%s2253_s9 + $0x70] sm:$0xff] }
 0x310   : > { %v1382_v22 = vpack.c.bf16 %v815_v21, %v814_v20 }
 0x311   : > { %v665_v50 = vmul.f32 %v1158_v47, %v658_v48 }
 0x312   : > { %1383 = vmatpush3.bf16.msra.mxu0 %v1382_v22 }
 0x313   : > { %v672_v51 = vadd.f32 %v1159_v49, %v665_v50 }
 0x315   : > { %1261 = vmatmul.mubr.f32.vlgmr.msra.gmra.mrb[0].mxu1 %v672_v51  ;;  %v1161_v51 = vld [vmem:[#allocation9] ss:$0 sm:$0xff] }
 0x316   : > { %1330 = vmatprep.mubr.msk.f32.mxu1 %vm1808_vm0, %v1809_v1  ;;  %1386 = vmatpush3.bf16.msra.mxu1 %v1385_v26 }
 0x317   : > { %1387 = vmatprep.subr.bf16.mxu1 %v1807_v0 }
 0x31a   : > { %1389 = vmatpush3.bf16.msra.mxu1 %v1388_v28 }
 0x31b   : > { %1390 = vmatprep.subr.bf16.mxu1 %v1807_v0 }
 0x31e   : > { %1392 = vmatpush3.bf16.msra.mxu1 %v1391_v31 }
 0x31f   : > { %1393 = vmatprep.subr.bf16.mxu1 %v1807_v0 }
 0x322   : > { %1395 = vmatpush3.bf16.msra.mxu1 %v1394_v34 }
 0x323   : > { %1396 = vmatprep.subr.bf16.mxu1 %v1807_v0 }
 0x326   : > { %1398 = vmatpush3.bf16.msra.mxu1 %v1397_v37 }
 0x327   : > { %1399 = vmatprep.subr.bf16.mxu1 %v1807_v0 }
 0x32a   : > { %1401 = vmatpush3.bf16.msra.mxu1 %v1400_v40 }
 0x32b   : > { %1402 = vmatprep.subr.bf16.mxu1 %v1807_v0 }
 0x32e   : > { %1404 = vmatpush3.bf16.msra.mxu1 %v1403_v43 }
 0x32f   : > { %1405 = vmatprep.subr.bf16.mxu1 %v1807_v0  ;;  %v911_v0 = vld [vmem:[#allocation13 + $0x78] sm:$0xff] }
 0x3e8   : > { %v762_v53 = vpop.f32.mrb[0].mxu1 }
 0x3e9   : > { %v763_v54 = vadd.f32 %v1160_v52, %v762_v53  ;;  %v1262_v55 = vpop.f32.mrb[1].mxu1  ;;  %v1162_v53 = vld [vmem:[#allocation10] ss:$0 sm:$0xff] }
 0x3eb   : > { %vm766_vm3 = vcmp.ge.f32.partialorder %v763_v54, 0.0  ;;  %v767_v56 = vmul.f32 0.1, %v763_v54 }
 0x3ed   : > { %v768_v57 = vsel %vm766_vm3, %v763_v54, %v767_v56  ;;  %v910_v56 = vld [vmem:[#allocation13 + $0x70] sm:$0xff] }
 0x3ee   : > { %771 = vadd.xlane.f32.xlu1 %v768_v57 }
 0x47b   : > { %v772_v1 = vpop.xlane.xlu1 %771 }
 0x47c   : > { %v2178_v2 = vmul.f32 0.03125, %v772_v1  ;;  %v1164_v1 = vld [vmem:[#allocation15] ss:$0 sm:$0xff] }
 0x47e   : > { %v2181_v3 = vsub.f32 %v768_v57, %v2178_v2  ;;  %v779_v44 = vmul.f32 96.0, %v2178_v2  ;;  %v1406_v57 = vpack.c.bf16 %v911_v0, %v910_v56 }
 0x480   : > { %v776_v4 = vmul.f32 %v2181_v3, %v2181_v3  ;;  %v780_v45 = vmul.f32 %v779_v44, %v2178_v2  ;;  %1407 = vmatpush3.bf16.msra.mxu1 %v1406_v57 }
 0x482   : > { %777 = vadd.xlane.f32.xlu1 %v776_v4 }
 0x50f   : > { %v778_v46 = vpop.xlane.xlu1 %777 }
 0x510   : > { %v781_v47 = vsub.f32 %v778_v46, %v780_v45 }
 0x512   : > { %v782_v48 = vmul.f32 0.03125, %v781_v47 }
 0x514   : > { %v783_v49 = vadd.f32 1e-05, %v782_v48 }
 0x516   : > { %1514 = vrsqrt.f32 %v783_v49 }
 0x520   : > { %v1515_v50 = vpop.eup %1514 }
 0x521   : > { %v785_v52 = vmul.f32 %v1515_v50, %v2181_v3 }
 0x523   : > { %v792_v54 = vmul.f32 %v1161_v51, %v785_v52 }
 0x525   : > { %v799_v55 = vadd.f32 %v1162_v53, %v792_v54 }
 0x527   : > { %1296 = vmatmul.mubr.f32.vlgmr.msra.gmra.mrb[2].mxu0 %v799_v55 }
 0x5fa   : > { %v889_v59 = vpop.f32.mrb[2].mxu0 }
 0x5fb   : > { %v890_v60 = vadd.f32 %v1163_v58, %v889_v59  ;;  %v1297_v61 = vpop.f32.mrb[3].mxu0 }
 0x5fd   : > { %vm893_vm4 = vcmp.ge.f32.partialorder %v890_v60, 0.0  ;;  %v894_v62 = vmul.f32 0.1, %v890_v60 }
 0x5ff   : > { %v895_v63 = vsel %vm893_vm4, %v890_v60, %v894_v62 }
 0x600   : > { %1331 = vmatmul.mubr.f32.vlgmr.msra.gmra.mrb[2].mxu1 %v895_v63 }
 0x6d3   : > { %v985_v2 = vpop.f32.mrb[2].mxu1 }
 0x6d4   : > { %v986_v3 = vadd.f32 %v1164_v1, %v985_v2  ;;  %v1332_v4 = vpop.f32.mrb[3].mxu1 }
 0x6d6   : > { %989 = vst [vmem:[%s554_s16] sm:$0xff] %v986_v3 }
 0x6d7 PF: > { %s2282_s25 = sld [smem:[#allocation21_spill]] }
 0x6dd   : > { %s28_s25 = sadd.s32 1, %s2282_s25  }
 0x6de   : > { %p25_p11 = scmp.ge.s32.totalorder %s28_s25, 5  }
 0x6e0   :  { %27 = sbr.rel (!%p25_p11) target bundleno = 9 (0x9), region = 139 }
 0x6e7   :  { %1009 = vsyncpa [#allocation3], 1 }
 0x6e8   :  { %1011 = vsyncpa [#allocation3 + $0x1], 1 }
 0x6e9   :  { %1012 = vsyncpa [#allocation5], 1 }
 0x6ea   :  { %1013 = vsyncpa [#allocation8], 1 }
 0x6eb   :  { %1014 = vsyncpa [#allocation11], 1 }
 0x6ec   :  { %1015 = vsyncpa [#allocation14], 1 }

</bundles_post_ra>
